<compile_context>
chip_gen: v5e
topology: v5e:2x2
jax: 0.10.0
libtpu: 0.0.40
codegen_flags: <defaults>
</compile_context>

<pallas_src>
import jax
import jax.numpy as jnp
from jax import lax
from jax.experimental import pallas as pl
from jax.experimental.pallas import tpu as pltpu

NEG_SLOPE = 0.01  # F.leaky_relu default negative_slope


def _mlp3_kernel(x_ref, w_ref, b_ref, o_ref):
    # x_ref: (n_mlp, TB) lane-dense   w_ref: (2, n_mlp)   b_ref: (2, 1)   o_ref: (2, TB)
    # Linear: contract n_mlp of w against the leading (sublane) dim of x -> (2, TB).
    logits = lax.dot_general(
        w_ref[...], x_ref[...],
        dimension_numbers=(((1,), (0,)), ((), ())),
        preferred_element_type=jnp.float32,
    ) + b_ref[...].astype(jnp.float32)   # no-op cast for f32 bias, keeps bf16 params safe

    # LeakyReLU (negative_slope = 0.01)
    act = jnp.where(logits > 0, logits, NEG_SLOPE * logits)

    # Softmax over exactly 2 classes == sigmoid of the logit difference.
    d = act[0:1, :] - act[1:2, :]        # (1, TB)
    p = jax.nn.sigmoid(d)                # EUP; no cross-lane reduce, no divide
    o_ref[0:1, :] = p.astype(o_ref.dtype)
    o_ref[1:2, :] = (1.0 - p).astype(o_ref.dtype)


def mlp3_forward_lane_dense(x_t, weight, bias, *, tile_b=32768):
    """Fast lane-dense path.

    x_t: (n_mlp, B) -- batch on the lane (minor) axis.
    weight: (2, n_mlp); bias: (2,).
    Returns probs_t: (2, B) float32 (classes on sublanes, batch on lanes).
    """
    n_mlp, B = x_t.shape
    n_out = weight.shape[0]              # 2
    bias2d = bias.reshape(n_out, 1)

    # Lane-align the batch, pick a tile, split evenly to minimize tail padding,
    # and prefer >= 2 tiles so the "parallel" grid axis can use both TCs (v7x).
    B128 = pl.cdiv(B, 128) * 128
    TB = min(int(tile_b), B128)
    num_tiles = pl.cdiv(B128, TB)
    if B128 >= 256:
        num_tiles = max(num_tiles, 2)
    TB = pl.cdiv(pl.cdiv(B128, num_tiles), 128) * 128
    B_pad = num_tiles * TB
    if B_pad != B:
        x_t = jnp.pad(x_t, ((0, 0), (0, B_pad - B)))

    out_t = pl.pallas_call(
        _mlp3_kernel,
        out_shape=jax.ShapeDtypeStruct((n_out, B_pad), jnp.float32),
        grid_spec=pltpu.PrefetchScalarGridSpec(
            num_scalar_prefetch=0,
            grid=(num_tiles,),
            in_specs=[
                pl.BlockSpec((n_mlp, TB), lambda i: (0, i)),      # x: tiled batch, lane-dense
                pl.BlockSpec((n_out, n_mlp), lambda i: (0, 0)),   # weight: VMEM-resident
                pl.BlockSpec((n_out, 1), lambda i: (0, 0)),       # bias: VMEM-resident
            ],
            out_specs=pl.BlockSpec((n_out, TB), lambda i: (0, i)),  # lane-dense output
        ),
        compiler_params=pltpu.CompilerParams(
            dimension_semantics=("parallel",),   # batch tiles independent -> megacore
        ),
    )(x_t, weight, bias2d)

    return out_t[:, :B]


def mlp3_forward(mlp_in, weight, bias, *, tile_b=32768, min_kernel_batch=4096):
    """Module-compatible wrapper: mlp_in (B, n_mlp) -> (B, 2), like MLP_3.forward."""
    B = mlp_in.shape[0]

    if B < min_kernel_batch:
        # Tiny batch: a pallas_call launch + one un-pipelined DMA dominates;
        # let XLA fuse the whole thing instead.
        logits = (mlp_in.astype(jnp.float32) @ weight.astype(jnp.float32).T
                  + bias.astype(jnp.float32))
        act = jnp.where(logits > 0, logits, NEG_SLOPE * logits)
        return jax.nn.softmax(act, axis=1)

    # TODO(synk): for best HBM traffic the producer should emit (n_mlp, B) and the
    # consumer accept (2, B) (call mlp3_forward_lane_dense directly); the two
    # transposes here are only to preserve the PyTorch (B, n_mlp)->(B, 2) contract.
    out_t = mlp3_forward_lane_dense(mlp_in.T, weight, bias, tile_b=tile_b)
    return out_t.T


if __name__ == "__main__":
    key = jax.random.PRNGKey(0)
    k_w, k_b, k_x1, k_x2 = jax.random.split(key, 4)

    n_mlp = 32

    # Deterministic parameter init (mimics nn.Linear's U(-1/sqrt(in), 1/sqrt(in)))
    bound = 1.0 / jnp.sqrt(jnp.float32(n_mlp))
    weight = jax.random.uniform(k_w, (2, n_mlp), jnp.float32, -bound, bound)
    bias = jax.random.uniform(k_b, (2,), jnp.float32, -bound, bound)

    def ref_fn(x):
        logits = x @ weight.T + bias
        act = jnp.where(logits > 0, logits, NEG_SLOPE * logits)
        return jax.nn.softmax(act, axis=1)

    # 1) Module-typical tiny batch -> jnp fallback path.
    B0 = 8
    x0 = jax.random.normal(k_x1, (B0, n_mlp), jnp.float32)
    out0 = mlp3_forward(x0, weight, bias)
    jax.block_until_ready(out0)
    assert out0.shape == (B0, 2)
    assert jnp.allclose(out0, ref_fn(x0), atol=1e-5, rtol=1e-5)

    # 2) Pallas kernel path: multi-tile grid with a ragged tail (small test tile).
    B1 = 300
    x1 = jax.random.normal(k_x2, (B1, n_mlp), jnp.float32)
    out1 = mlp3_forward(x1, weight, bias, tile_b=128, min_kernel_batch=0)
    jax.block_until_ready(out1)
    assert out1.shape == (B1, 2)
    assert jnp.allclose(out1, ref_fn(x1), atol=1e-5, rtol=1e-5)

    # 3) Lane-dense fast entry point used directly ((n_mlp, B) in, (2, B) out).
    out2 = mlp3_forward_lane_dense(x1.T, weight, bias, tile_b=256)
    jax.block_until_ready(out2)
    assert out2.shape == (2, B1)
    assert jnp.allclose(out2.T, ref_fn(x1), atol=1e-5, rtol=1e-5)

    print("KERNEL_OK")
</pallas_src>

<mosaic_0001>
module attributes {stable_mosaic.version = 11 : i64} {
  func.func @_mlp3_kernel(%arg0: i32, %arg1: memref<32x128xf32, #tpu.memory_space<vmem>>, %arg2: memref<2x32xf32, #tpu.memory_space<vmem>>, %arg3: memref<2x1xf32, #tpu.memory_space<vmem>>, %arg4: memref<2x128xf32, #tpu.memory_space<vmem>>) attributes {dimension_semantics = [#tpu.dimension_semantics<parallel>], iteration_bounds = array<i64: 3>, scalar_prefetch = 0 : i64, scratch_operands = 0 : i64, tpu.core_type = #tpu.core_type<tc>, window_params = [{transform_indices = @transform_0, window_bounds = array<i64: 32, 128>}, {pipeline_mode = #tpu.pipeline_mode<synchronous>, transform_indices = @transform_1, window_bounds = array<i64: 2, 32>}, {pipeline_mode = #tpu.pipeline_mode<synchronous>, transform_indices = @transform_2, window_bounds = array<i64: 2, 1>}, {transform_indices = @transform_3, window_bounds = array<i64: 2, 128>}]} {
    %c0 = arith.constant 0 : index
    %c0_0 = arith.constant 0 : index
    %0 = vector.load %arg2[%c0, %c0_0] : memref<2x32xf32, #tpu.memory_space<vmem>>, vector<2x32xf32>
    %c0_1 = arith.constant 0 : index
    %c0_2 = arith.constant 0 : index
    %1 = vector.load %arg1[%c0_1, %c0_2] : memref<32x128xf32, #tpu.memory_space<vmem>>, vector<32x128xf32>
    %cst = arith.constant dense<0.000000e+00> : vector<2x128xf32>
    %2 = tpu.matmul %0, %1, %cst {dimension_numbers = #tpu.dot_dimension_numbers<[1], [0], [0], [1], [0, 0, 1, 1], [], []>} : vector<2x32xf32>, vector<32x128xf32>, vector<2x128xf32> -> vector<2x128xf32>
    %c0_3 = arith.constant 0 : index
    %c0_4 = arith.constant 0 : index
    %3 = vector.load %arg3[%c0_3, %c0_4] : memref<2x1xf32, #tpu.memory_space<vmem>>, vector<2x1xf32>
    %4 = vector.broadcast %3 : vector<2x1xf32> to vector<2x128xf32>
    %5 = arith.addf %2, %4 : vector<2x128xf32>
    %cst_5 = arith.constant 0.000000e+00 : f32
    %6 = vector.broadcast %cst_5 : f32 to vector<2x128xf32>
    %7 = arith.cmpf ogt, %5, %6 : vector<2x128xf32>
    %cst_6 = arith.constant 0.00999999977 : f32
    %8 = vector.broadcast %cst_6 : f32 to vector<2x128xf32>
    %9 = arith.mulf %8, %5 : vector<2x128xf32>
    %10 = arith.select %7, %5, %9 : vector<2x128xi1>, vector<2x128xf32>
    %11 = vector.extract_strided_slice %10 {offsets = [0, 0], sizes = [1, 128], strides = [1, 1]} : vector<2x128xf32> to vector<1x128xf32>
    %12 = vector.extract_strided_slice %10 {offsets = [1, 0], sizes = [1, 128], strides = [1, 1]} : vector<2x128xf32> to vector<1x128xf32>
    %13 = arith.subf %11, %12 : vector<1x128xf32>
    %14 = arith.negf %13 : vector<1x128xf32>
    %15 = math.exp %14 : vector<1x128xf32>
    %cst_7 = arith.constant 1.000000e+00 : f32
    %16 = vector.broadcast %cst_7 : f32 to vector<1x128xf32>
    %17 = arith.addf %16, %15 : vector<1x128xf32>
    %18 = arith.divf %16, %17 : vector<1x128xf32>
    %c0_8 = arith.constant 0 : index
    %c0_9 = arith.constant 0 : index
    %19 = vector.load %arg4[%c0_8, %c0_9] : memref<2x128xf32, #tpu.memory_space<vmem>>, vector<1x128xf32>
    tpu.vector_store %arg4[%c0_8, %c0_9], %18 {strides = array<i32>} : memref<2x128xf32, #tpu.memory_space<vmem>>, vector<1x128xf32>,
    %cst_10 = arith.constant 1.000000e+00 : f32
    %20 = vector.broadcast %cst_10 : f32 to vector<1x128xf32>
    %21 = arith.subf %20, %18 : vector<1x128xf32>
    %c1 = arith.constant 1 : index
    %c0_11 = arith.constant 0 : index
    %22 = vector.load %arg4[%c1, %c0_11] : memref<2x128xf32, #tpu.memory_space<vmem>>, vector<1x128xf32>
    tpu.vector_store %arg4[%c1, %c0_11], %21 {strides = array<i32>} : memref<2x128xf32, #tpu.memory_space<vmem>>, vector<1x128xf32>,
    return
  }
  func.func @transform_0(%arg0: i32) -> (i32, i32) {
    %c0_i32 = arith.constant 0 : i32
    %c0_i32_0 = arith.constant 0 : i32
    return %c0_i32, %arg0 : i32, i32
  }
  func.func @transform_1(%arg0: i32) -> (i32, i32) {
    %c0_i32 = arith.constant 0 : i32
    %c0_i32_0 = arith.constant 0 : i32
    %c0_i32_1 = arith.constant 0 : i32
    return %c0_i32, %c0_i32_0 : i32, i32
  }
  func.func @transform_2(%arg0: i32) -> (i32, i32) {
    %c0_i32 = arith.constant 0 : i32
    %c0_i32_0 = arith.constant 0 : i32
    %c0_i32_1 = arith.constant 0 : i32
    return %c0_i32, %c0_i32_0 : i32, i32
  }
  func.func @transform_3(%arg0: i32) -> (i32, i32) {
    %c0_i32 = arith.constant 0 : i32
    %c0_i32_0 = arith.constant 0 : i32
    return %c0_i32, %arg0 : i32, i32
  }
}

</mosaic_0001>

<bundles_post_ra>
// kernel: tpu_custom_call.1
= control target key start
LH: loop header
LB: loop body
LE: loop exit
PB: predicated region body
PF: predicated region fallthrough
CT: control target
= control target key end

     0   :  { %8 = vsyncpa [#allocation3], 0  ;;  %s661_s0 = inlined_call_operand.hbm [shape: f32[32,384], index: 0, kind: input, shape index: {}]   ;;  %s662_s1 = inlined_call_operand.vmem [shape: f32[2,32], index: 1, kind: input, shape index: {}]   ;;  %s663_s2 = inlined_call_operand.vmem [shape: f32[2,1], index: 2, kind: input, shape index: {}]   ;;  %s664_s3 = inlined_call_operand.hbm [shape: f32[2,384], index: 3, kind: output, shape index: {}]  }
   0x1   :  { %10 = vsyncpa [#allocation3 + $0x1], 0 }
   0x2   :  { %11 = vsyncpa [#allocation4], 0 }
   0x3   :  { %13 = vsyncpa [#allocation4 + $0x1], 0  ;;  %s531_s12 = smov 0   ;;  %s533_s13 = smov 0  }
   0x4   :  { %s535_s14 = smov 0   ;;  %s537_s15 = smov 0  }
   0x5 LB: > { %s552_s16 = sadd.s32 4294967295, %s505_s15   ;;  %s340_s17 = sadd.s32 4294967294, %s505_s15   ;;  %s505_s15 = sphi %s537_s15, %s673_s15   ;;  %s501_s14 = sphi %s535_s14, %s672_s14   ;;  %s497_s13 = sphi %s533_s13, %s671_s13   ;;  %s493_s12 = sphi %s531_s12, %s670_s12  }
   0x6   : > { %s556_s18 = sadd.s32 1, %s505_s15   ;;  %s26_s19 = sadd.s32 1, %s501_s14 }
   0x7   : > { %s23_s20 = ssub.s32 %s505_s15, %s556_s18  ;;  %p33_p0 = scmp.ne.s32.totalorder %s501_s14, %s497_s13 }
   0x8   : > { %p24_p1 = scmp.eq.s32.totalorder %s23_s20, 0  ;;  %p34_p2 = scmp.eq.s32.totalorder %s505_s15, 0 }
   0x9   : > { %p39_p3 = scmp.ne.s32.totalorder %s497_s13, %s493_s12  ;;  %p40_p4 = scmp.eq.s32.totalorder %s552_s16, 0 }
   0xa   : > { %s568_s21 = scalar_select %p24_p1, %s501_s14, %s26_s19  }
   0xb   : > { %p570_p5 = por %p34_p2, %p33_p0  ;;  %p574_p6 = por %p40_p4, %p39_p3 }
   0xc   : > { %p105_p7 = scmp.eq.s32.totalorder %s552_s16, 2  ;;  %p111_p8 = scmp.eq.s32.totalorder %s340_s17, 2 }
   0xd   : > { %p366_p9 = scmp.lt.s32.totalorder %s505_s15, 3  ;;  %s137_s26 = sand.u32 1, %s501_s14  }
   0xe   : > { %p580_p10 = por %p105_p7, %p33_p0  ;;  %p584_p11 = por %p111_p8, %p39_p3 }
   0xf   : > { %s344_s27 = sshll.u32 %s505_s15, 3  ;;  %s343_s28 = sshll.u32 %s137_s26, 5 }
  0x10   : > { %s145_s4 = scalar_lea.hbm %s661_s0, %s344_s27  ;;  %s141_s6 = scalar_lea.vmem [#allocation2], %s343_s28 }
  0x11   : > { %s146_s5 = sshll.u32 %s145_s4, 4  ;;  %s148_s7 = sshll.u32 %s141_s6, 4  ;;  %s147_s5 = int_to_ptr.hbm [resolvable:$true] %s146_s5  ;;  %s149_s7 = int_to_ptr.vmem [resolvable:$true] %s148_s7 }
  0x12   : > { %p595_p12 = pnand %p366_p9, %p570_p5  ;;  %p345_p13 = scmp.ge.s32.totalorder %s505_s15, 1 }
  0x13   : > { %s138_s9 = scalar_lea.sflag [#allocation3], %s137_s26  ;;  %s409_s10 = sshra.s32 %s147_s5, 4  ;;  %s410_s10 = int_to_ptr.hbm [resolvable:$true] %s409_s10 }
  0x14   : > { %s411_s11 = scalar_lea.hbm %s410_s10, 32  ;;  %p413_p1 = pneg %p595_p12 }
  0x15   : > { %p412_p0 = scmp.ne.s32.totalorder %s410_s10, %s411_s11  ;;  %s416_s20 = scalar_lea.hbm %s661_s0, 96 }
  0x16   : > { %p417_p4 = scmp.lt.s32.totalorder %s410_s10, %s661_s0  ;;  %p418_p5 = scmp.lt.s32.totalorder %s416_s20, %s411_s11 }
  0x17   : > { %p414_p2 = pnand %p413_p1, %p412_p0 }
  0x18   : > { %p419_p7 = por %p418_p5, %p417_p4 }
  0x19   : > { %p415_p3 = pneg %p414_p2 }
  0x1b   : > { %p420_p8 = pnand %p419_p7, %p415_p3 }
  0x1d   : > { %423 = shalt.err (!%p420_p8)
}
  0x1e   : > { %s507_s26 = smov 384   ;;  %s508_s28 = smov 128  }
  0x1f   : > { %s509_s29 = smov 8   ;;  %p156_p9 = scmp.lt.s32.totalorder %s505_s15, 4 }
  0x20   : > { %361 = dma.hbm_to_vmem [thread:$0]  (!%p595_p12), %s147_s5, 512, %s149_s7, %s138_s9, %s507_s26, %s508_s28, %s509_s29  }
  0x21   : > { %p157_p0 = pnand %p345_p13, %p156_p9 }
  0x22   : > { %s614_s30 = sand.u32 (!%p157_p0), 1, %s497_s13  }
  0x23   : > { %160 = sbr.rel (%p157_p0) target bundleno = 217 (0xd9), region = 32  ;;  %s346_s4 = sshll.u32 (!%p157_p0), %s614_s30, 5 }
  0x24   : > { %s163_s6 = scalar_lea.sflag (!%p157_p0), [#allocation3], %s614_s30  ;;  %s166_s10 = scalar_lea.vmem (!%p157_p0), [#allocation2], %s346_s4 }
  0x28   : > { %484 = dma.done.wait (%p574_p6), %s163_s6, 512  }
  0x29   : > { %486 = vsyncadd (%p574_p6), %s163_s6, 4294966784  ;;  %v510_v0 = vmov 0   ;;  %v194_v1 = vld [vmem:[%s166_s10 + $0x18] sm:$0xff]  ;;  %v193_v2 = vld [vmem:[%s166_s10 + $0x10] sm:$0xff]  ;;  %vm201_vm0 = vcmask 261120   ;;  %s347_s23 = sshll.u32 %s614_s30, 1 }
  0x2a   : > { %404 = vset.pattern.permute.xlu0 %v510_v0  ;;  %217 = vmatpush.msra.mxu0 %v194_v1  ;;  %v195_v3 = vld [vmem:[%s663_s2] sm:$0x3]  ;;  %v192_v4 = vld [vmem:[%s166_s10 + $0x8] sm:$0xff]  ;;  %s351_s11 = sshll.u32 %s552_s16, 1  ;;  %s189_s22 = scalar_lea.vmem [#allocation5], %s347_s23 }
  0x2b   : > { %198 = vperm.xlu0 %404, %v195_v3   ;;  %v191_v5 = vld [vmem:[%s166_s10] sm:$0xff]  ;;  %s265_s20 = scalar_lea.hbm %s664_s3, %s351_s11  ;;  %s267_s27 = sshll.u32 %s189_s22, 4  ;;  %s268_s27 = int_to_ptr.vmem [resolvable:$true] %s267_s27 }
  0x2c   : > { %218 = vmatpush.msra.mxu0 %v193_v2  ;;  %v190_v6 = vld [vmem:[%s662_s1] sm:$0x3]  ;;  %s269_s26 = sshll.u32 %s265_s20, 4  ;;  %s255_s16 = scalar_lea.sflag [#allocation4], %s614_s30  ;;  %s270_s26 = int_to_ptr.hbm [resolvable:$true] %s269_s26 }
  0x2d   : > { %s453_s28 = sshra.s32 %s270_s26, 4  ;;  %s459_s10 = scalar_lea.hbm %s664_s3, 6  ;;  %s454_s28 = int_to_ptr.hbm [resolvable:$true] %s453_s28 }
  0x2e   : > { %219 = vmatpush.msra.mxu0 %v192_v4  ;;  %s455_s29 = scalar_lea.hbm %s454_s28, 2  ;;  %p460_p1 = scmp.lt.s32.totalorder %s454_s28, %s664_s3 }
  0x2f   : > { %p456_p6 = scmp.ne.s32.totalorder %s454_s28, %s455_s29  ;;  %p461_p2 = scmp.lt.s32.totalorder %s459_s10, %s455_s29 }
  0x30   : > { %220 = vmatpush.msra.mxu0 %v191_v5 }
  0x31   : > { %348 = vmatmul.msk.f32.vlgmr.msra.gmra.mxu0 %vm201_vm0, %v190_v6  ;;  %p457_p12 = pnand %p456_p6, %p580_p10  ;;  %p462_p3 = por %p461_p2, %p460_p1 }
  0x33   : > { %p458_p13 = pneg %p457_p12 }
  0x35   : > { %p463_p4 = pnand %p462_p3, %p458_p13 }
  0x9d   : > { %v199_v7 = vpop.permute.xlu0 %198 }
  0xae   : > { %v222_v8 = vpop.f32.mrf.mxu0 }
  0xaf   : > { %v223_v9 = vadd.f32 %v222_v8, %v199_v7 }
  0xb1   : > { %vm225_vm1 = vcmp.gt.f32.partialorder %v223_v9, 0.0  ;;  %v226_v10 = vmul.f32 0.01, %v223_v9 }
  0xb3   : > { %v227_v11 = vsel %vm225_vm1, %v223_v9, %v226_v10 }
  0xb4   : > { %v229_v12 = vrot.slane %v227_v11, 1 }
  0xb6   : > { %v231_v13 = vsub.f32 %v227_v11, %v229_v12 }
  0xb8   : > { %v349_v14 = vmul.f32 -1.442695, %v231_v13 }
  0xba   : > { %405 = vpow2.f32 %v349_v14 }
  0xc0   : > { %v406_v15 = vpop.eup %405 }
  0xc1   : > { %v235_v16 = vadd.f32 1.0, %v406_v15 }
  0xc3   : > { %407 = vrcp.f32 %v235_v16  ;;  %v247_v20 = vand.u32 2147483648, %v235_v16  ;;  %v245_v22 = vand.u32 2147483647, %v235_v16  ;;  %vm241_vm3 = vweird.f32 %v235_v16 }
  0xc5   : > { %v248_v24 = vor.u32 1.1754944e-38, %v247_v20  ;;  %vm246_vm5 = vcmp.eq.f32.partialorder %v245_v22, 8.507059e+37 }
  0xc9   : > { %v408_v17 = vpop.eup %407 }
  0xca   : > { %v237_v18 = vmul.f32 %v408_v17, %v235_v16  ;;  %vm242_vm2 = vweird.f32 %v408_v17 }
  0xcb   : > { %vm243_vm4 = vmor %vm241_vm3, %vm242_vm2 }
  0xcc   : > { %v238_v19 = vsub.f32 1.0, %v237_v18 }
  0xce   : > { %v239_v21 = vmul.f32 %v408_v17, %v238_v19 }
  0xd0   : > { %v240_v23 = vadd.f32 %v408_v17, %v239_v21 }
  0xd2   : > { %v244_v25 = vsel %vm243_vm4, %v408_v17, %v240_v23 }
  0xd3   : > { %v249_v26 = vsel %vm246_vm5, %v248_v24, %v244_v25 }
  0xd4   : > { %251 = vst [vmem:[%s189_s22] sm:$0x1] %v249_v26  ;;  %v252_v27 = vsub.f32 1.0, %v249_v26 }
  0xd6   : > { %253 = vst [vmem:[%s189_s22 + $0x1] sm:$0x1] %v252_v27 }
  0xd7   : > { %466 = shalt.err (!%p463_p4)
}
  0xd8   : > { %356 = dma.vmem_to_hbm [thread:$0]  (%p580_p10), %s268_s27, 32, %s270_s26, %s255_s16  }
  0xd9 PF: > { %p367_p5 = scmp.ge.s32.totalorder %s505_s15, 2  ;;  %s281_s30 = sand.u32 1, %s493_s12  }
  0xda   : > { %s282_s8 = scalar_lea.sflag [#allocation4], %s281_s30 }
  0xdb   : > { %p363_p7 = pnand %p367_p5, %p584_p11 }
  0xdd   : > { %p364_p8 = pneg %p363_p7 }
  0xdf   : > { %488 = dma.done.wait (%p364_p8), %s282_s8, 32  }
  0xe0   : > { %490 = vsyncadd (%p364_p8), %s282_s8, 4294967264  ;;  %p16_p9 = scmp.ge.s32.totalorder %s556_s18, 5   ;;  %s670_s12 = smov %s497_s13 }
  0xe1   : > { %s671_s13 = smov %s501_s14  ;;  %s672_s14 = smov %s568_s21 }
  0xe2   : > { %s673_s15 = smov %s556_s18  ;;  %18 = sbr.rel (!%p16_p9) target bundleno = 5 (0x5), region = 77 }
  0xe7   :  { %288 = vsyncpa [#allocation3], 1 }
  0xe8   :  { %290 = vsyncpa [#allocation3 + $0x1], 1 }
  0xe9   :  { %291 = vsyncpa [#allocation4], 1 }
  0xea   :  { %293 = vsyncpa [#allocation4 + $0x1], 1 }

</bundles_post_ra>
